<compile_context>
chip_gen: v7x
topology: tpu7x:2x2x1
jax: 0.10.0
libtpu: 0.0.40
codegen_flags: <defaults>
</compile_context>

<pallas_src>
import functools

import jax
import jax.numpy as jnp
from jax import lax
from jax.experimental import pallas as pl
from jax.experimental.pallas import tpu as pltpu

_LANES = 128


def _iou_kernel(pred_ref, targ_ref, out_ref,
                inter_acc, psum_acc, tsum_acc,
                *, eps, threshold, rows, need_mask):
    k = pl.program_id(1)
    nk = pl.num_programs(1)

    @pl.when(k == 0)
    def _():
        inter_acc[...] = jnp.zeros_like(inter_acc)
        psum_acc[...] = jnp.zeros_like(psum_acc)
        tsum_acc[...] = jnp.zeros_like(tsum_acc)

    tile_r = pred_ref.shape[1]
    # Upcast AFTER the DMA: native-dtype blocks stream from HBM, accumulation
    # stays in f32.
    p = pred_ref[0].astype(jnp.float32)        # (tile_r, 128)
    t = targ_ref[0].astype(jnp.float32)        # (tile_r, 128)

    hit = p > threshold                        # _threshold(prediction)
    if need_mask:                              # static: only for ragged tiles
        row = lax.broadcasted_iota(jnp.int32, (tile_r, _LANES), 0) + k * tile_r
        valid = row < rows
        hit = hit & valid
        t = jnp.where(valid, t, 0.0)

    pred_bin = hit.astype(jnp.float32)
    inter = jnp.where(hit, t, 0.0)             # == pred_bin * t (pred_bin in {0,1})

    # Fold each (tile_r, 128) contribution down the sublane axis; the lane axis
    # is reduced only once at the very end.
    inter_acc[...] += jnp.sum(inter, axis=0, keepdims=True)
    psum_acc[...] += jnp.sum(pred_bin, axis=0, keepdims=True)
    tsum_acc[...] += jnp.sum(t, axis=0, keepdims=True)

    @pl.when(k == nk - 1)
    def _():
        i_s = jnp.sum(inter_acc[...], axis=1, keepdims=True)   # (1, 1)
        p_s = jnp.sum(psum_acc[...], axis=1, keepdims=True)
        t_s = jnp.sum(tsum_acc[...], axis=1, keepdims=True)
        union = p_s + t_s - i_s
        iou = (i_s + eps) / (union + eps)
        out_ref[0] = jnp.broadcast_to(iou, (8, _LANES))


def iou_batch(prediction, target, *, eps=1e-7, threshold=0.5,
              per_image=True, reduction="none", tile_rows=4096):
    """JAX/Pallas port of IoUBatch.forward (defaults match the module)."""
    # Mismatched-shape branch of the reference (plain-JAX glue, elementwise).
    if prediction.shape != target.shape:
        target1, target2 = target[:, 0], target[:, 1]
        t = target[:, 2]
        target = t * target1 + (1 - t) * target2

    batch_size = target.shape[0] if per_image else 1

    pred_f = jnp.reshape(prediction, (batch_size, -1))
    targ_f = jnp.reshape(target, (batch_size, -1))
    if pred_f.shape != targ_f.shape:
        raise ValueError(
            f"flattened prediction {pred_f.shape} and target {targ_f.shape} "
            "do not match after the IoUBatch shape-mismatch branch")
    n = pred_f.shape[1]

    # Lane relayout: (B, N) -> (B, N//128, 128).  A contiguous reshape is free
    # (metadata only) when 128 | N; only the rare ragged-N case pays a minimal
    # zero-pad (inert: padded pred thresholds to 0, padded target adds 0).
    if n % _LANES != 0:
        # TODO(synk): fold the <128-element tail into a wrapper-side partial
        # sum instead of padding, to avoid this HBM copy for odd N.
        pad = _LANES - n % _LANES
        pred_f = jnp.pad(pred_f, ((0, 0), (0, pad)))
        targ_f = jnp.pad(targ_f, ((0, 0), (0, pad)))
    rows = pred_f.shape[1] // _LANES
    pred_r = pred_f.reshape(batch_size, rows, _LANES)
    targ_r = targ_f.reshape(batch_size, rows, _LANES)

    tile_r = int(min(tile_rows, rows))
    k_steps = pl.cdiv(rows, tile_r)
    need_mask = (rows % tile_r) != 0

    kernel = functools.partial(_iou_kernel, eps=eps, threshold=threshold,
                               rows=rows, need_mask=need_mask)

    out = pl.pallas_call(
        kernel,
        out_shape=jax.ShapeDtypeStruct((batch_size, 8, _LANES), jnp.float32),
        grid_spec=pltpu.PrefetchScalarGridSpec(
            num_scalar_prefetch=0,
            grid=(batch_size, k_steps),
            in_specs=[
                pl.BlockSpec((1, tile_r, _LANES), lambda b, k: (b, k, 0)),
                pl.BlockSpec((1, tile_r, _LANES), lambda b, k: (b, k, 0)),
            ],
            out_specs=pl.BlockSpec((1, 8, _LANES), lambda b, k: (b, 0, 0)),
            scratch_shapes=[
                pltpu.VMEM((1, _LANES), jnp.float32),
                pltpu.VMEM((1, _LANES), jnp.float32),
                pltpu.VMEM((1, _LANES), jnp.float32),
            ],
        ),
        compiler_params=pltpu.CompilerParams(
            dimension_semantics=("parallel", "arbitrary")),
    )(pred_r, targ_r)

    iou = out[:, 0, 0]

    if reduction == "mean":
        return jnp.mean(iou)
    elif reduction == "sum":
        return jnp.sum(iou)
    return iou


def _reference(prediction, target, *, eps=1e-7, threshold=0.5):
    # pure-JAX reference of the PyTorch module (per_image=True, reduction='none')
    p = (prediction > threshold).astype(prediction.dtype)
    b = target.shape[0]
    p = p.reshape(b, -1)
    t = target.reshape(b, -1)
    inter = jnp.sum(p * t, axis=1)
    union = jnp.sum(p, axis=1) + jnp.sum(t, axis=1) - inter
    return (inter + eps) / (union + eps)


if __name__ == "__main__":
    key = jax.random.PRNGKey(0)
    k1, k2 = jax.random.split(key)
    # NCHW inputs, small shapes
    x_shape = (2, 4, 16, 16)
    prediction = jax.random.uniform(k1, x_shape, dtype=jnp.float32)
    target = (jax.random.uniform(k2, x_shape, dtype=jnp.float32) > 0.5).astype(
        jnp.float32)

    iou = iou_batch(prediction, target)
    jax.block_until_ready(iou)

    ref = _reference(prediction, target)
    assert iou.shape == (2,)
    assert jnp.allclose(iou, ref, atol=1e-6, rtol=1e-6), (iou, ref)

    print("KERNEL_OK")
</pallas_src>

<mosaic_0001>
module attributes {stable_mosaic.version = 11 : i64} {
  func.func @_iou_kernel(%arg0: i32, %arg1: i32, %arg2: memref<1x8x128xf32, #tpu.memory_space<vmem>>, %arg3: memref<1x8x128xf32, #tpu.memory_space<vmem>>, %arg4: memref<1x8x128xf32, #tpu.memory_space<vmem>>, %arg5: memref<1x128xf32, #tpu.memory_space<vmem>>, %arg6: memref<1x128xf32, #tpu.memory_space<vmem>>, %arg7: memref<1x128xf32, #tpu.memory_space<vmem>>) attributes {dimension_semantics = [#tpu.dimension_semantics<parallel>, #tpu.dimension_semantics<arbitrary>], iteration_bounds = array<i64: 2, 1>, scalar_prefetch = 0 : i64, scratch_operands = 3 : i64, tpu.core_type = #tpu.core_type<tc>, window_params = [{transform_indices = @transform_0, window_bounds = array<i64: 1, 8, 128>}, {transform_indices = @transform_1, window_bounds = array<i64: 1, 8, 128>}, {transform_indices = @transform_2, window_bounds = array<i64: 1, 8, 128>}]} {
    %c0_i32 = arith.constant 0 : i32
    %0 = arith.cmpi eq, %arg1, %c0_i32 : i32
    %1 = arith.extui %0 : i1 to i32
    %c0_i32_0 = arith.constant 0 : i32
    %2 = arith.cmpi ne, %1, %c0_i32_0 : i32
    scf.if %2 {
      %cst_24 = arith.constant 0.000000e+00 : f32
      %31 = vector.broadcast %cst_24 : f32 to vector<1x128xf32>
      %c0_25 = arith.constant 0 : index
      %c0_26 = arith.constant 0 : index
      %32 = vector.load %arg5[%c0_25, %c0_26] : memref<1x128xf32, #tpu.memory_space<vmem>>, vector<1x128xf32>
      tpu.vector_store %arg5[%c0_25, %c0_26], %31 {strides = array<i32>} : memref<1x128xf32, #tpu.memory_space<vmem>>, vector<1x128xf32>,
      %cst_27 = arith.constant 0.000000e+00 : f32
      %33 = vector.broadcast %cst_27 : f32 to vector<1x128xf32>
      %c0_28 = arith.constant 0 : index
      %c0_29 = arith.constant 0 : index
      %34 = vector.load %arg6[%c0_28, %c0_29] : memref<1x128xf32, #tpu.memory_space<vmem>>, vector<1x128xf32>
      tpu.vector_store %arg6[%c0_28, %c0_29], %33 {strides = array<i32>} : memref<1x128xf32, #tpu.memory_space<vmem>>, vector<1x128xf32>,
      %cst_30 = arith.constant 0.000000e+00 : f32
      %35 = vector.broadcast %cst_30 : f32 to vector<1x128xf32>
      %c0_31 = arith.constant 0 : index
      %c0_32 = arith.constant 0 : index
      %36 = vector.load %arg7[%c0_31, %c0_32] : memref<1x128xf32, #tpu.memory_space<vmem>>, vector<1x128xf32>
      tpu.vector_store %arg7[%c0_31, %c0_32], %35 {strides = array<i32>} : memref<1x128xf32, #tpu.memory_space<vmem>>, vector<1x128xf32>,
    } else {
    }
    %c0 = arith.constant 0 : index
    %c0_1 = arith.constant 0 : index
    %c0_2 = arith.constant 0 : index
    %3 = vector.load %arg2[%c0, %c0_1, %c0_2] : memref<1x8x128xf32, #tpu.memory_space<vmem>>, vector<1x8x128xf32>
    %4 = vector.shape_cast %3 : vector<1x8x128xf32> to vector<8x128xf32>
    %c0_3 = arith.constant 0 : index
    %c0_4 = arith.constant 0 : index
    %c0_5 = arith.constant 0 : index
    %5 = vector.load %arg3[%c0_3, %c0_4, %c0_5] : memref<1x8x128xf32, #tpu.memory_space<vmem>>, vector<1x8x128xf32>
    %6 = vector.shape_cast %5 : vector<1x8x128xf32> to vector<8x128xf32>
    %cst = arith.constant 5.000000e-01 : f32
    %7 = vector.broadcast %cst : f32 to vector<8x128xf32>
    %8 = arith.cmpf ogt, %4, %7 : vector<8x128xf32>
    %9 = arith.extui %8 : vector<8x128xi1> to vector<8x128xi32>
    %10 = arith.sitofp %9 : vector<8x128xi32> to vector<8x128xf32>
    %cst_6 = arith.constant 0.000000e+00 : f32
    %11 = vector.broadcast %cst_6 : f32 to vector<8x128xf32>
    %12 = arith.select %8, %6, %11 : vector<8x128xi1>, vector<8x128xf32>
    %c0_7 = arith.constant 0 : index
    %c0_8 = arith.constant 0 : index
    %13 = vector.load %arg5[%c0_7, %c0_8] : memref<1x128xf32, #tpu.memory_space<vmem>>, vector<1x128xf32>
    %cst_9 = arith.constant dense<0.000000e+00> : vector<128xf32>
    %14 = vector.multi_reduction <add>, %12, %cst_9 [0] : vector<8x128xf32> to vector<128xf32>
    %15 = vector.shape_cast %14 : vector<128xf32> to vector<1x128xf32>
    %16 = arith.addf %13, %15 : vector<1x128xf32>
    %c0_10 = arith.constant 0 : index
    %c0_11 = arith.constant 0 : index
    %17 = vector.load %arg5[%c0_10, %c0_11] : memref<1x128xf32, #tpu.memory_space<vmem>>, vector<1x128xf32>
    tpu.vector_store %arg5[%c0_10, %c0_11], %16 {strides = array<i32>} : memref<1x128xf32, #tpu.memory_space<vmem>>, vector<1x128xf32>,
    %c0_12 = arith.constant 0 : index
    %c0_13 = arith.constant 0 : index
    %18 = vector.load %arg6[%c0_12, %c0_13] : memref<1x128xf32, #tpu.memory_space<vmem>>, vector<1x128xf32>
    %cst_14 = arith.constant dense<0.000000e+00> : vector<128xf32>
    %19 = vector.multi_reduction <add>, %10, %cst_14 [0] : vector<8x128xf32> to vector<128xf32>
    %20 = vector.shape_cast %19 : vector<128xf32> to vector<1x128xf32>
    %21 = arith.addf %18, %20 : vector<1x128xf32>
    %c0_15 = arith.constant 0 : index
    %c0_16 = arith.constant 0 : index
    %22 = vector.load %arg6[%c0_15, %c0_16] : memref<1x128xf32, #tpu.memory_space<vmem>>, vector<1x128xf32>
    tpu.vector_store %arg6[%c0_15, %c0_16], %21 {strides = array<i32>} : memref<1x128xf32, #tpu.memory_space<vmem>>, vector<1x128xf32>,
    %c0_17 = arith.constant 0 : index
    %c0_18 = arith.constant 0 : index
    %23 = vector.load %arg7[%c0_17, %c0_18] : memref<1x128xf32, #tpu.memory_space<vmem>>, vector<1x128xf32>
    %cst_19 = arith.constant dense<0.000000e+00> : vector<128xf32>
    %24 = vector.multi_reduction <add>, %6, %cst_19 [0] : vector<8x128xf32> to vector<128xf32>
    %25 = vector.shape_cast %24 : vector<128xf32> to vector<1x128xf32>
    %26 = arith.addf %23, %25 : vector<1x128xf32>
    %c0_20 = arith.constant 0 : index
    %c0_21 = arith.constant 0 : index
    %27 = vector.load %arg7[%c0_20, %c0_21] : memref<1x128xf32, #tpu.memory_space<vmem>>, vector<1x128xf32>
    tpu.vector_store %arg7[%c0_20, %c0_21], %26 {strides = array<i32>} : memref<1x128xf32, #tpu.memory_space<vmem>>, vector<1x128xf32>,
    %c0_i32_22 = arith.constant 0 : i32
    %28 = arith.cmpi eq, %arg1, %c0_i32_22 : i32
    %29 = arith.extui %28 : i1 to i32
    %c0_i32_23 = arith.constant 0 : i32
    %30 = arith.cmpi ne, %29, %c0_i32_23 : i32
    scf.if %30 {
      %c0_24 = arith.constant 0 : index
      %c0_25 = arith.constant 0 : index
      %31 = vector.load %arg5[%c0_24, %c0_25] : memref<1x128xf32, #tpu.memory_space<vmem>>, vector<1x128xf32>
      %cst_26 = arith.constant dense<0.000000e+00> : vector<1xf32>
      %32 = vector.multi_reduction <add>, %31, %cst_26 [1] : vector<1x128xf32> to vector<1xf32>
      %33 = vector.shape_cast %32 : vector<1xf32> to vector<1x1xf32>
      %c0_27 = arith.constant 0 : index
      %c0_28 = arith.constant 0 : index
      %34 = vector.load %arg6[%c0_27, %c0_28] : memref<1x128xf32, #tpu.memory_space<vmem>>, vector<1x128xf32>
      %cst_29 = arith.constant dense<0.000000e+00> : vector<1xf32>
      %35 = vector.multi_reduction <add>, %34, %cst_29 [1] : vector<1x128xf32> to vector<1xf32>
      %36 = vector.shape_cast %35 : vector<1xf32> to vector<1x1xf32>
      %c0_30 = arith.constant 0 : index
      %c0_31 = arith.constant 0 : index
      %37 = vector.load %arg7[%c0_30, %c0_31] : memref<1x128xf32, #tpu.memory_space<vmem>>, vector<1x128xf32>
      %cst_32 = arith.constant dense<0.000000e+00> : vector<1xf32>
      %38 = vector.multi_reduction <add>, %37, %cst_32 [1] : vector<1x128xf32> to vector<1xf32>
      %39 = vector.shape_cast %38 : vector<1xf32> to vector<1x1xf32>
      %40 = arith.addf %36, %39 : vector<1x1xf32>
      %41 = arith.subf %40, %33 : vector<1x1xf32>
      %cst_33 = arith.constant 1.000000e-07 : f32
      %42 = vector.broadcast %cst_33 : f32 to vector<1x1xf32>
      %43 = arith.addf %33, %42 : vector<1x1xf32>
      %cst_34 = arith.constant 1.000000e-07 : f32
      %44 = vector.broadcast %cst_34 : f32 to vector<1x1xf32>
      %45 = arith.addf %41, %44 : vector<1x1xf32>
      %46 = arith.divf %43, %45 : vector<1x1xf32>
      %47 = vector.shape_cast %46 : vector<1x1xf32> to vector<1x1xf32>
      %48 = vector.broadcast %47 : vector<1x1xf32> to vector<8x128xf32>
      %c0_35 = arith.constant 0 : index
      %c0_36 = arith.constant 0 : index
      %c0_37 = arith.constant 0 : index
      %49 = vector.load %arg4[%c0_35, %c0_36, %c0_37] : memref<1x8x128xf32, #tpu.memory_space<vmem>>, vector<1x8x128xf32>
      %50 = vector.shape_cast %49 : vector<1x8x128xf32> to vector<8x128xf32>
      %51 = vector.shape_cast %48 : vector<8x128xf32> to vector<1x8x128xf32>
      tpu.vector_store %arg4[%c0_35, %c0_36, %c0_37], %51 {strides = array<i32>} : memref<1x8x128xf32, #tpu.memory_space<vmem>>, vector<1x8x128xf32>,
    } else {
    }
    return
  }
  func.func @transform_0(%arg0: i32, %arg1: i32) -> (i32, i32, i32) {
    %c0_i32 = arith.constant 0 : i32
    %c0_i32_0 = arith.constant 0 : i32
    return %arg0, %arg1, %c0_i32 : i32, i32, i32
  }
  func.func @transform_1(%arg0: i32, %arg1: i32) -> (i32, i32, i32) {
    %c0_i32 = arith.constant 0 : i32
    %c0_i32_0 = arith.constant 0 : i32
    return %arg0, %arg1, %c0_i32 : i32, i32, i32
  }
  func.func @transform_2(%arg0: i32, %arg1: i32) -> (i32, i32, i32) {
    %c0_i32 = arith.constant 0 : i32
    %c0_i32_0 = arith.constant 0 : i32
    %c0_i32_1 = arith.constant 0 : i32
    return %arg0, %c0_i32, %c0_i32_0 : i32, i32, i32
  }
}

</mosaic_0001>

<bundles_post_ra>
// kernel: tpu_custom_call.1
= control target key start
LH: loop header
LB: loop body
LE: loop exit
PB: predicated region body
PF: predicated region fallthrough
CT: control target
= control target key end

     0   :  { %7 = vsyncpa [#allocation6], 0  ;;  %s877_s0 = inlined_call_operand.hbm [shape: f32[2,8,128], index: 0, kind: input, shape index: {}]   ;;  %s878_s1 = inlined_call_operand.hbm [shape: f32[2,8,128], index: 1, kind: input, shape index: {}]   ;;  %s879_s2 = inlined_call_operand.hbm [shape: f32[2,8,128], index: 2, kind: output, shape index: {}]  }
   0x1   :  { %9 = vsyncpa [#allocation6 + $0x1], 0 }
   0x2   :  { %10 = vsyncpa [#allocation9], 0 }
   0x3   :  { %12 = vsyncpa [#allocation9 + $0x1], 0 }
   0x4   :  { %13 = vsyncpa [#allocation7], 0 }
   0x5   :  { %15 = vsyncpa [#allocation7 + $0x1], 0  ;;  %s652_s9 = smov 0   ;;  %s654_s10 = smov 0  }
   0x6   :  { %s656_s11 = smov 0   ;;  %s658_s12 = smov 0  }
   0x7   :  { %s660_s13 = smov 0   ;;  %s662_s14 = smov 0  }
   0x8 LB: > { %s398_s15 = sadd.s32 4294967295, %s631_s14   ;;  %s399_s16 = sadd.s32 4294967294, %s631_s14   ;;  %s631_s14 = sphi %s662_s14, %s21_s14   ;;  %s627_s13 = sphi %s660_s13, %s899_s13   ;;  %s623_s12 = sphi %s658_s12, %s898_s12   ;;  %s619_s11 = sphi %s656_s11, %s897_s11   ;;  %s615_s10 = sphi %s654_s10, %s896_s10   ;;  %s611_s9 = sphi %s652_s9, %s895_s9  }
   0x9   : > { %s33_s17 = sadd.s32 1, %s627_s13  ;;  %s42_s18 = sadd.s32 1, %s619_s11 }
   0xa   : > { %p35_p0 = scmp.ge.s32.totalorder %s33_s17, 2  ;;  %p49_p1 = scmp.ne.s32.totalorder %s619_s11, %s615_s10 }
   0xb   : > { %p50_p2 = scmp.eq.s32.totalorder %s631_s14, 0  ;;  %p55_p3 = scmp.ne.s32.totalorder %s615_s10, %s611_s9 }
   0xc   : > { %s901_s17 = smov (%p35_p0, %s33_s17), 0  ;;  %p56_p5 = scmp.eq.s32.totalorder %s398_s15, 0 }
   0xd   : > { %p693_p4 = por %p50_p2, %p49_p1  ;;  %s37_s20 = ssub.s32 %s627_s13, %s901_s17 }
   0xe   : > { %p107_p6 = scmp.eq.s32.totalorder %s398_s15, 1  ;;  %p40_p7 = scmp.eq.s32.totalorder %s37_s20, 0 }
   0xf   : > { %p699_p8 = por %p56_p5, %p55_p3  ;;  %p113_p10 = scmp.eq.s32.totalorder %s399_s16, 1 }
  0x10   : > { %p703_p9 = por %p107_p6, %p49_p1  ;;  %p432_p13 = scmp.lt.s32.totalorder %s631_s14, 2 }
  0x11   : > { %s883_s21 = scalar_select %p699_p8, 1, 0 }
  0x12   : > { %s884_s22 = scalar_select %p703_p9, 1, 0 }
  0x13   : > { %s708_s23 = scalar_select %p40_p7, %s619_s11, %s42_s18  }
  0x14   : > { %p710_p11 = por %p113_p10, %p55_p3  ;;  %s717_s25 = sand.u32 1, %s619_s11  }
  0x15   : > { %s402_s26 = sshll.u32 %s717_s25, 3  ;;  %s403_s27 = sshll.u32 %s627_s13, 7 }
  0x16   : > { %s885_s24 = scalar_select %p710_p11, 1, 0 }
  0x17   : > { %s726_s30 = scalar_lea.hbm %s877_s0, %s403_s27  ;;  %s137_s3 = scalar_lea.vmem [#allocation5], %s402_s26 }
  0x18   : > { %s145_s4 = sshll.u32 %s137_s3, 4  ;;  %p734_p0 = pnand %p432_p13, %p693_p4  ;;  %s730_s4 = int_to_ptr.vmem [resolvable:$true] %s145_s4 }
  0x19   : > { %s134_s6 = scalar_lea.sflag [#allocation6], %s717_s25  ;;  %s485_s7 = scalar_lea.hbm %s726_s30, 128 }
  0x1a   : > { %p486_p3 = scmp.ne.s32.totalorder %s726_s30, %s485_s7  ;;  %p487_p5 = pneg %p734_p0 }
  0x1b   : > { %s490_s16 = scalar_lea.hbm %s877_s0, 256  ;;  %p491_p4 = scmp.lt.u32.totalorder %s726_s30, %s877_s0 }
  0x1c   : > { %p488_p6 = pnand %p487_p5, %p486_p3  ;;  %p492_p10 = scmp.lt.u32.totalorder %s490_s16, %s485_s7 }
  0x1d   : > { %p494_p12 = scmp.lt.u32.totalorder %s485_s7, %s726_s30 }
  0x1e   : > { %p489_p7 = pneg %p488_p6  ;;  %p493_p13 = por %p492_p10, %p491_p4 }
  0x20   : > { %p495_p1 = por %p494_p12, %p493_p13 }
  0x22   : > { %p496_p2 = pnand %p495_p1, %p489_p7 }
  0x24   : > { %499 = shalt.err (!%p496_p2)
}
  0x25   : > { %s500_s20 = scalar_lea.vmem %s730_s4, 128  ;;  %s633_s28 = smov [#allocation5]  }
  0x26   : > { %p501_p3 = scmp.ne.s32.totalorder %s730_s4, %s500_s20  ;;  %s505_s29 = sshll.u32 %s633_s28, 4  ;;  %s506_s29 = int_to_ptr.vmem [resolvable:$false] %s505_s29 }
  0x27   : > { %s507_s3 = scalar_lea.vmem %s506_s29, 256  ;;  %p508_p9 = scmp.lt.s32.totalorder %s730_s4, %s506_s29 }
  0x28   : > { %p503_p6 = pnand %p501_p3, %p487_p5  ;;  %p509_p4 = scmp.lt.s32.totalorder %s507_s3, %s500_s20 }
  0x2a   : > { %p504_p11 = pneg %p503_p6  ;;  %p510_p10 = por %p509_p4, %p508_p9 }
  0x2c   : > { %p511_p12 = pnand %p510_p10, %p504_p11 }
  0x2e   : > { %514 = shalt.err (!%p511_p12)
}
  0x2f   : > { %424 = dma.hbm_to_vmem [thread:$0]  (!%p734_p0), %s726_s30, 128, %s730_s4, %s134_s6  }
  0x30   : > { %p887_p1 = scmp.lt.s32.totalorder %s631_s14, 3  ;;  %p888_p2 = scmp.ge.s32.totalorder %s631_s14, 1 }
  0x31   : > { %s779_s16 = scalar_lea.hbm %s878_s1, %s403_s27  ;;  %s156_s18 = scalar_lea.vmem [#allocation8], %s402_s26 }
  0x32   : > { %p770_p7 = pnand %p888_p2, %p887_p1  ;;  %s164_s19 = sshll.u32 %s156_s18, 4  ;;  %s165_s19 = int_to_ptr.vmem [resolvable:$true] %s164_s19 }
  0x33   : > { %s153_s30 = scalar_lea.sflag [#allocation9], %s717_s25  ;;  %s515_s4 = scalar_lea.hbm %s779_s16, 128 }
  0x34   : > { %s889_s7 = scalar_select %p770_p7, 1, 0 }
  0x35   : > { %p516_p9 = scmp.ne.s32.totalorder %s779_s16, %s515_s4  ;;  %s520_s27 = scalar_lea.hbm %s878_s1, 256 }
  0x36   : > { %p521_p3 = scmp.lt.u32.totalorder %s779_s16, %s878_s1  ;;  %p522_p6 = scmp.lt.u32.totalorder %s520_s27, %s515_s4 }
  0x37   : > { %p518_p11 = pnand %p516_p9, %p487_p5  ;;  %p524_p10 = scmp.lt.u32.totalorder %s515_s4, %s779_s16 }
  0x38   : > { %p523_p4 = por %p522_p6, %p521_p3 }
  0x39   : > { %p519_p13 = pneg %p518_p11 }
  0x3a   : > { %p525_p12 = por %p524_p10, %p523_p4 }
  0x3c   : > { %p526_p1 = pnand %p525_p12, %p519_p13 }
  0x3e   : > { %529 = shalt.err (!%p526_p1)
}
  0x3f   : > { %s530_s25 = scalar_lea.vmem %s165_s19, 128  ;;  %s634_s26 = smov [#allocation8]  }
  0x40   : > { %p531_p2 = scmp.ne.s32.totalorder %s165_s19, %s530_s25  ;;  %s535_s3 = sshll.u32 %s634_s26, 4  ;;  %s536_s3 = int_to_ptr.vmem [resolvable:$false] %s535_s3 }
  0x41   : > { %s537_s8 = scalar_lea.vmem %s536_s3, 256  ;;  %p538_p8 = scmp.lt.s32.totalorder %s165_s19, %s536_s3 }
  0x42   : > { %p533_p9 = pnand %p531_p2, %p487_p5  ;;  %p539_p7 = scmp.lt.s32.totalorder %s537_s8, %s530_s25 }
  0x44   : > { %p534_p11 = pneg %p533_p9  ;;  %p540_p3 = por %p539_p7, %p538_p8 }
  0x46   : > { %p541_p6 = pnand %p540_p3, %p534_p11 }
  0x48   : > { %544 = shalt.err (!%p541_p6)
}
  0x49   : > { %427 = dma.hbm_to_vmem [thread:$0]  (!%p734_p0), %s779_s16, 128, %s165_s19, %s153_s30  }
  0x4a   : > { %p890_p13 = scmp.ne.s32.totalorder %s889_s7, 0 }
  0x4b   : > { %s806_s15 = sand.u32 (!%p890_p13), 1, %s615_s10   ;;  %p891_p8 = scmp.ne.s32.totalorder (!%p890_p13), %s883_s21, 0 }
  0x4c   : > { %173 = sbr.rel (%p890_p13) target bundleno = 293 (0x125), region = 28  ;;  %s809_s18 = sshll.u32 (!%p890_p13), %s806_s15, 3 }
  0x4d   : > { %s176_s4 = scalar_lea.sflag (!%p890_p13), [#allocation6], %s806_s15  ;;  %s179_s6 = scalar_lea.vmem (!%p890_p13), [#allocation5], %s809_s18 }
  0x53   : > { %598 = dma.done.wait (%p891_p8), %s176_s4, 128  }
  0x54   : > { %600 = vsyncadd (%p891_p8), %s176_s4, 4294967168  ;;  %s185_s5 = scalar_lea.sflag [#allocation9], %s806_s15  ;;  %s188_s7 = scalar_lea.vmem [#allocation8], %s809_s18 }
  0x55   : > { %602 = dma.done.wait (%p891_p8), %s185_s5, 128  }
  0x56   : > { %604 = vsyncadd (%p891_p8), %s185_s5, 4294967168  ;;  %v635_v0 = vmov 0.0   ;;  %v221_v1 = vld [vmem:[%s179_s6] sm:$0xff]  ;;  %v222_v2 = vld [vmem:[%s188_s7] sm:$0xff]  ;;  %vm258_vm1 = vcmask 1040384   ;;  %v276_v41 = vlaneseq  ;;  %s412_s21 = sshll.u32 %s623_s12, 7 }
  0x57   : > { %219 = vst [vmem:[#allocation3] sm:$0x1] %v635_v0  ;;  %218 = vst [vmem:[#allocation2] sm:$0x1] %v635_v0  ;;  %vm223_vm0 = vcmp.gt.f32.partialorder %v221_v1, 0.5  ;;  %v246_v3 = vrot.slane %v222_v2, 4  ;;  %s828_s27 = scalar_lea.hbm %s879_s2, %s412_s21 }
  0x58   : > { %220 = vst [vmem:[#allocation4] sm:$0x1] %v635_v0  ;;  %v410_v4 = vsel %vm223_vm0, 1.0, %v635_v0  ;;  %v226_v5 = vsel %vm223_vm0, %v222_v2, 0.0  ;;  %v277_v42 = vshrl.u32 %v276_v41, 7  ;;  %s213_s16 = scalar_lea.vmem [#allocation10], %s809_s18 }
  0x59   : > { %v237_v6 = vrot.slane %v410_v4, 4  ;;  %v247_v7 = vadd.f32 %v246_v3, %v222_v2  ;;  %v228_v8 = vrot.slane %v226_v5, 4  ;;  %s295_s19 = sshll.u32 %s213_s16, 4  ;;  %s282_s28 = scalar_lea.sflag [#allocation7], %s806_s15  ;;  %s830_s19 = int_to_ptr.vmem [resolvable:$true] %s295_s19 }
  0x5a   : > { %v278_v43 = vsub.s32 0, %v277_v42  ;;  %s545_s29 = scalar_lea.vmem %s830_s19, 128  ;;  %p892_p5 = scmp.ne.s32.totalorder %s884_s22, 0 }
  0x5b   : > { %v238_v9 = vadd.f32 %v410_v4, %v237_v6  ;;  %v248_v10 = vrot.slane %v247_v7, 2  ;;  %v229_v11 = vadd.f32 %v228_v8, %v226_v5  ;;  %p546_p0 = scmp.ne.s32.totalorder %s830_s19, %s545_s29  ;;  %s636_s12 = smov [#allocation10]  }
  0x5c   : > { %s549_s25 = sshll.u32 %s636_s12, 4  ;;  %s550_s25 = int_to_ptr.vmem [resolvable:$false] %s549_s25 }
  0x5d   : > { %v239_v12 = vrot.slane %v238_v9, 2  ;;  %v249_v13 = vadd.f32 %v248_v10, %v247_v7  ;;  %v230_v14 = vrot.slane %v229_v11, 2  ;;  %p547_p7 = pnand %p546_p0, %p892_p5  ;;  %s551_s26 = scalar_lea.vmem %s550_s25, 256 }
  0x5e   : > { %v236_v22 = vld [vmem:[#allocation3] sm:$0x1]  ;;  %v227_v23 = vld [vmem:[#allocation2] sm:$0x1]  ;;  %p552_p10 = scmp.lt.s32.totalorder %s830_s19, %s550_s25  ;;  %p553_p12 = scmp.lt.s32.totalorder %s551_s26, %s545_s29 }
  0x5f   : > { %v240_v15 = vadd.f32 %v239_v12, %v238_v9  ;;  %v250_v16 = vrot.slane %v249_v13, 1  ;;  %v231_v17 = vadd.f32 %v230_v14, %v229_v11  ;;  %v245_v18 = vld [vmem:[#allocation4] sm:$0x1]  ;;  %p548_p4 = pneg %p547_p7 }
  0x60   : > { %p554_p1 = por %p553_p12, %p552_p10 }
  0x61   : > { %v241_v19 = vrot.slane %v240_v15, 1  ;;  %v251_v20 = vadd.f32 %v250_v16, %v249_v13  ;;  %v232_v21 = vrot.slane %v231_v17, 1 }
  0x62   : > { %p555_p2 = pnand %p554_p1, %p548_p4 }
  0x63   : > { %v242_v24 = vadd.f32 %v241_v19, %v240_v15  ;;  %v252_v25 = vadd.f32 %v251_v20, %v245_v18  ;;  %v233_v26 = vadd.f32 %v232_v21, %v231_v17 }
  0x65   : > { %v243_v27 = vadd.f32 %v242_v24, %v236_v22  ;;  %253 = vst [vmem:[#allocation4] sm:$0x1] %v252_v25  ;;  %v234_v28 = vadd.f32 %v233_v26, %v227_v23 }
  0x67   : > { %244 = vst [vmem:[#allocation3] sm:$0x1] %v243_v27  ;;  %235 = vst [vmem:[#allocation2] sm:$0x1] %v234_v28 }
  0x6c   : > { %v266_v30 = vld [vmem:[#allocation4] sm:$0x1] }
  0x6d   : > { %v267_v34 = vsel %vm258_vm1, %v266_v30, 0.0 }
  0x6e   : > { %v262_v29 = vld [vmem:[#allocation3] sm:$0x1]  ;;  %v257_v31 = vld [vmem:[#allocation2] sm:$0x1] }
  0x6f   : > { %v263_v32 = vsel %vm258_vm1, %v262_v29, 0.0  ;;  %v259_v33 = vsel %vm258_vm1, %v257_v31, 0.0 }
  0x70   : > { %264 = vadd.xlane.f32.xlu0 %v263_v32  ;;  %260 = vadd.xlane.f32.xlu1 %v259_v33 }
  0x74   : > { %268 = vadd.xlane.f32.xlu0 %v267_v34 }
  0xfd   : > { %v265_v35 = vpop.xlane.xlu0 %264  ;;  %v261_v37 = vpop.xlane.xlu1 %260 }
  0xfe   : > { %v272_v44 = vadd.f32 1e-07, %v261_v37 }
 0x101   : > { %v269_v36 = vpop.xlane.xlu0 %268 }
 0x102   : > { %v270_v38 = vadd.f32 %v269_v36, %v265_v35 }
 0x104   : > { %v271_v39 = vsub.f32 %v270_v38, %v261_v37 }
 0x106   : > { %v273_v40 = vadd.f32 1e-07, %v271_v39 }
 0x108   : > { %483 = vrcp.f32 %v273_v40 }
 0x112   : > { %v484_v45 = vpop.eup %483 }
 0x113   : > { %v275_v46 = vmul.f32 %v484_v45, %v272_v44 }
 0x115   : > { %v279_v47 = vrot.slane %v275_v46, %v278_v43 }
 0x117   : > { %280 = vst [vmem:[%s213_s16] sm:$0xff] %v279_v47 }
 0x118   : > { %558 = shalt.err (!%p555_p2)
}
 0x119   : > { %s559_s3 = scalar_lea.hbm %s828_s27, 128  ;;  %s563_s18 = scalar_lea.hbm %s879_s2, 256 }
 0x11a   : > { %p560_p9 = scmp.ne.s32.totalorder %s828_s27, %s559_s3  ;;  %p564_p6 = scmp.lt.u32.totalorder %s828_s27, %s879_s2 }
 0x11b   : > { %p565_p13 = scmp.lt.u32.totalorder %s563_s18, %s559_s3  ;;  %p567_p0 = scmp.lt.u32.totalorder %s559_s3, %s828_s27 }
 0x11c   : > { %p561_p11 = pnand %p560_p9, %p892_p5 }
 0x11d   : > { %p566_p8 = por %p565_p13, %p564_p6 }
 0x11e   : > { %p562_p3 = pneg %p561_p11 }
 0x11f   : > { %p568_p7 = por %p567_p0, %p566_p8 }
 0x121   : > { %p569_p4 = pnand %p568_p7, %p562_p3 }
 0x123   : > { %572 = shalt.err (!%p569_p4)
}
 0x124   : > { %419 = dma.vmem_to_hbm [thread:$0]  (%p892_p5), %s830_s19, 128, %s828_s27, %s282_s28  }
 0x125 PF: > { %s307_s5 = sand.u32 1, %s611_s9   ;;  %p893_p10 = scmp.ne.s32.totalorder %s885_s24, 0 }
 0x126   : > { %p894_p12 = scmp.ge.s32.totalorder %s631_s14, 2  ;;  %s308_s7 = scalar_lea.sflag [#allocation7], %s307_s5 }
 0x128   : > { %p429_p1 = pnand %p894_p12, %p893_p10 }
 0x12a   : > { %606 = dma.done.wait (!%p429_p1), %s308_s7, 128  }
 0x12b   : > { %608 = vsyncadd (!%p429_p1), %s308_s7, 4294967168  ;;  %s21_s14 = sadd.s32 1, %s631_s14   ;;  %s895_s9 = smov %s615_s10 }
 0x12c   : > { %p18_p2 = scmp.ge.s32.totalorder %s21_s14, 4   ;;  %s896_s10 = smov %s619_s11 }
 0x12d   : > { %s897_s11 = smov %s708_s23  ;;  %s898_s12 = smov %s627_s13 }
 0x12e   : > { %s899_s13 = smov %s901_s17  ;;  %20 = sbr.rel (!%p18_p2) target bundleno = 8 (0x8), region = 94 }
 0x135   :  { %313 = vsyncpa [#allocation6], 1 }
 0x136   :  { %315 = vsyncpa [#allocation6 + $0x1], 1 }
 0x137   :  { %316 = vsyncpa [#allocation9], 1 }
 0x138   :  { %318 = vsyncpa [#allocation9 + $0x1], 1 }
 0x139   :  { %319 = vsyncpa [#allocation7], 1 }
 0x13a   :  { %321 = vsyncpa [#allocation7 + $0x1], 1 }

</bundles_post_ra>
